<compile_context>
chip_gen: v7x
topology: tpu7x:2x2x1
jax: 0.10.0
libtpu: 0.0.40
codegen_flags: <defaults>
</compile_context>

<pallas_src>
import functools

import jax
import jax.numpy as jnp
from jax.experimental import pallas as pl
from jax.experimental.pallas import tpu as pltpu


def _rope_kernel(offset_ref, freq_ref, x_ref, o_ref):
    """Rotate interleaved pairs on a lane-dense (TILE_B, TILE_S, H*D) tile.

    offset_ref: SMEM (1,) int32   — tokens preceding this input (scalar prefetch)
    freq_ref  : VMEM (1, H*D) f32 — signed inv-freq per lane:
                                    lane h*D+2k -> -1/theta**(2k/D),
                                    lane h*D+2k+1 -> +1/theta**(2k/D)
    x_ref     : VMEM (TILE_B, TILE_S, H*D) input tile (natural interleaved layout)
    o_ref     : VMEM (TILE_B, TILE_S, H*D)
    """
    tb, ts, hd = x_ref.shape

    # Absolute position of the first row of this sequence tile.
    base = offset_ref[0] + pl.program_id(1) * ts
    row = jax.lax.broadcasted_iota(jnp.int32, (ts, hd), 0) + base      # (ts, hd)
    ang = row.astype(jnp.float32) * freq_ref[...]                      # (1,hd) bcast
    cos = jnp.cos(ang)          # EUP — idle in this memory-bound kernel
    sin_s = jnp.sin(ang)        # sign already folded: -sin even lane, +sin odd

    # Pair-partner swap via cheap XLU lane rotations + a (1, hd) parity select.
    lane = jax.lax.broadcasted_iota(jnp.int32, (1, hd), 1)
    even = (lane & 1) == 0                                              # (1, hd)

    # tb is small (<= 8, see _pick_tiles); static unroll keeps all vector ops 2D.
    for bi in range(tb):
        x = x_ref[bi].astype(jnp.float32)                               # (ts, hd)
        nbr_hi = pltpu.roll(x, shift=hd - 1, axis=1)                    # [j] -> x[j+1]
        nbr_lo = pltpu.roll(x, shift=1, axis=1)                         # [j] -> x[j-1]
        swapped = jnp.where(even, nbr_hi, nbr_lo)                       # pair partner
        o_ref[bi] = (cos * x + sin_s * swapped).astype(o_ref.dtype)     # full-width store


def _vmem_plan():
    """Returns (tile element budget, scoped-VMEM limit), tuned per generation."""
    budget_bytes = 2 * 1024 * 1024          # f32-equivalent bytes per tile
    vmem_limit = 32 * 1024 * 1024           # >= every chip's scoped default
    try:
        info = pltpu.get_tpu_info()
        vmem_cap = getattr(info, "vmem_capacity_bytes", None)
        if vmem_cap is not None and vmem_cap <= 64 * 1024 * 1024:
            # v7x-class (64 MiB VMEM, ~3.2 TB/s HBM): bigger tiles amortize the
            # fixed per-grid-step overhead; still well inside physical VMEM.
            budget_bytes = 4 * 1024 * 1024
            vmem_limit = 48 * 1024 * 1024
    except Exception:
        pass                                # keep conservative defaults
    return budget_bytes // 4, vmem_limit


def _pick_tiles(B: int, S: int, HD: int, budget_elems: int):
    """Pick (tile_b, tile_s) so each grid step moves ~budget_elems elements."""
    rows = max(1, budget_elems // HD)       # sequence rows per tile at tile_b=1
    if rows >= S or S <= 8:
        tile_s = S                          # full-S block (always valid)
    else:
        tile_s = min(S, max(8, (rows // 8) * 8))   # multiple of 8 (sublane rule)

    tile_b = 1
    if tile_s == S:
        # Decode / small-S: pack several batch rows per step so per-step DMAs
        # are not tiny.  Cap the in-kernel unroll at 8.
        tile_b = int(min(B, max(1, rows // max(S, 1)), 8))

    # Guarantee >= 2 grid steps when the shape allows, so both v7x TensorCores
    # get work (no effect on single-TC v5e/v6e).
    if pl.cdiv(B, tile_b) * pl.cdiv(S, tile_s) < 2:
        if B >= 2:
            tile_b = (B + 1) // 2
        elif S >= 9:
            tile_s = max(8, (S // 2) // 8 * 8)
    return tile_b, tile_s


@functools.partial(jax.jit, static_argnames=("max_seq_len", "theta"))
def rope_pallas(x, offset, *, max_seq_len: int, theta: float):
    """x: [B, S, H, D]; offset: dynamic int32 scalar (tokens preceding x)."""
    assert x.ndim == 4, f"x.shape: {x.shape}"
    B, S, H, D = x.shape
    assert D % 2 == 0
    assert S <= max_seq_len
    HD = H * D

    # Tiny constant (1, HD) signed inverse-frequency row; no traced deps, so
    # XLA constant-folds it (zero per-call cost).
    inv_freq = 1.0 / theta ** (jnp.arange(0, D, 2, dtype=jnp.float32) / D)     # (D/2,)
    sign = jnp.array([-1.0, 1.0], jnp.float32)
    freq = jnp.tile((inv_freq[:, None] * sign[None, :]).reshape(1, D), (1, H))  # (1, HD)

    # Collapsing the trailing (H, D) dims is a free (no-copy) reshape.
    x2 = x.reshape(B, S, HD)
    offset_arr = jnp.asarray(offset, jnp.int32).reshape(1)

    budget_elems, vmem_limit = _vmem_plan()
    tile_b, tile_s = _pick_tiles(B, S, HD, budget_elems)
    grid = (pl.cdiv(B, tile_b), pl.cdiv(S, tile_s))

    out2 = pl.pallas_call(
        _rope_kernel,
        out_shape=jax.ShapeDtypeStruct((B, S, HD), x.dtype),
        grid_spec=pltpu.PrefetchScalarGridSpec(
            num_scalar_prefetch=1,          # offset -> SMEM
            grid=grid,
            in_specs=[
                # constant block index -> DMA'd into VMEM once, reused every step
                pl.BlockSpec((1, HD), lambda b, s, off: (0, 0)),
                pl.BlockSpec((tile_b, tile_s, HD), lambda b, s, off: (b, s, 0)),
            ],
            out_specs=pl.BlockSpec((tile_b, tile_s, HD), lambda b, s, off: (b, s, 0)),
        ),
        compiler_params=pltpu.CompilerParams(
            dimension_semantics=("parallel", "parallel"),
            vmem_limit_bytes=vmem_limit,
        ),
    )(offset_arr, freq, x2)

    return out2.reshape(B, S, H, D)


def rope_reference(x, offset, max_seq_len, theta):
    """Pure-JAX reference matching the PyTorch module exactly."""
    B, S, H, D = x.shape
    half = D // 2
    inv_freq = 1.0 / theta ** (jnp.arange(0, D, 2, dtype=jnp.float32) / D)
    pos = (offset + jnp.arange(S, dtype=jnp.float32))[:, None]
    ang = pos * inv_freq[None, :]                       # (S, D/2)
    cos = jnp.cos(ang)[None, :, None, :]
    sin = jnp.sin(ang)[None, :, None, :]
    xp = x.astype(jnp.float32).reshape(B, S, H, half, 2)
    xe, xo = xp[..., 0], xp[..., 1]
    ye = cos * xe - sin * xo
    yo = sin * xe + cos * xo
    return jnp.stack([ye, yo], axis=-1).reshape(B, S, H, D).astype(x.dtype)


if __name__ == "__main__":
    # Small shapes consistent with [BATCH, SEQ_LEN, NUM_HEADS, HEAD_DIM]
    BATCH, SEQ_LEN, NUM_HEADS, HEAD_DIM = 2, 8, 4, 32
    MAX_SEQ_LEN, THETA = 16, 10000.0
    OFFSET = 2

    key = jax.random.PRNGKey(0)
    x = jax.random.normal(key, (BATCH, SEQ_LEN, NUM_HEADS, HEAD_DIM),
                          dtype=jnp.float32)

    ref = rope_reference(x, OFFSET, MAX_SEQ_LEN, THETA)

    # offset is a traced argument -> changing it per decode step does NOT
    # trigger recompilation.
    out = rope_pallas(x, jnp.int32(OFFSET), max_seq_len=MAX_SEQ_LEN, theta=THETA)
    out = jax.block_until_ready(out)

    assert out.shape == x.shape and out.dtype == x.dtype
    assert jnp.allclose(out, ref, atol=2e-5, rtol=2e-5), "mismatch vs reference"

    print("KERNEL_OK")
</pallas_src>

<mosaic_0001>
module attributes {stable_mosaic.version = 11 : i64} {
  func.func @_rope_kernel(%arg0: i32, %arg1: i32, %arg2: memref<1xi32, #tpu.memory_space<smem>>, %arg3: memref<1x128xf32, #tpu.memory_space<vmem>>, %arg4: memref<1x8x128xf32, #tpu.memory_space<vmem>>, %arg5: memref<1x8x128xf32, #tpu.memory_space<vmem>>) attributes {dimension_semantics = [#tpu.dimension_semantics<parallel>, #tpu.dimension_semantics<parallel>], iteration_bounds = array<i64: 2, 1>, scalar_prefetch = 1 : i64, scratch_operands = 0 : i64, tpu.core_type = #tpu.core_type<tc>, window_params = [{pipeline_mode = #tpu.pipeline_mode<synchronous>, transform_indices = @transform_0, window_bounds = array<i64: 1, 128>}, {transform_indices = @transform_1, window_bounds = array<i64: 1, 8, 128>}, {transform_indices = @transform_2, window_bounds = array<i64: 1, 8, 128>}]} {
    %c0 = arith.constant 0 : index
    %0 = memref.load %arg2[%c0] : memref<1xi32, #tpu.memory_space<smem>>
    %c8_i32 = arith.constant 8 : i32
    %1 = arith.muli %arg1, %c8_i32 : i32
    %2 = arith.addi %0, %1 : i32
    %3 = tpu.iota {dimensions = array<i32: 0>} : vector<8x128xi32>
    %4 = vector.broadcast %2 : i32 to vector<8x128xi32>
    %5 = arith.addi %3, %4 : vector<8x128xi32>
    %6 = arith.sitofp %5 : vector<8x128xi32> to vector<8x128xf32>
    %c0_0 = arith.constant 0 : index
    %c0_1 = arith.constant 0 : index
    %7 = vector.load %arg3[%c0_0, %c0_1] : memref<1x128xf32, #tpu.memory_space<vmem>>, vector<1x128xf32>
    %8 = vector.broadcast %7 : vector<1x128xf32> to vector<8x128xf32>
    %9 = arith.mulf %6, %8 : vector<8x128xf32>
    %10 = math.cos %9 : vector<8x128xf32>
    %11 = math.sin %9 : vector<8x128xf32>
    %12 = tpu.iota {dimensions = array<i32: 1>} : vector<1x128xi32>
    %c1_i32 = arith.constant 1 : i32
    %13 = vector.broadcast %c1_i32 : i32 to vector<1x128xi32>
    %14 = arith.andi %12, %13 : vector<1x128xi32>
    %c0_i32 = arith.constant 0 : i32
    %15 = vector.broadcast %c0_i32 : i32 to vector<1x128xi32>
    %16 = arith.cmpi eq, %14, %15 : vector<1x128xi32>
    %c0_2 = arith.constant 0 : index
    %c0_3 = arith.constant 0 : index
    %c0_4 = arith.constant 0 : index
    %17 = vector.load %arg4[%c0_2, %c0_3, %c0_4] : memref<1x8x128xf32, #tpu.memory_space<vmem>>, vector<1x8x128xf32>
    %18 = vector.shape_cast %17 : vector<1x8x128xf32> to vector<8x128xf32>
    %c127_i32 = arith.constant 127 : i32
    %19 = tpu.dynamic_rotate %18 by %c127_i32 dim 1 : vector<8x128xf32>, i32 -> vector<8x128xf32>
    %c1_i32_5 = arith.constant 1 : i32
    %20 = tpu.dynamic_rotate %18 by %c1_i32_5 dim 1 : vector<8x128xf32>, i32 -> vector<8x128xf32>
    %21 = vector.shape_cast %16 : vector<1x128xi1> to vector<1x128xi1>
    %22 = vector.broadcast %21 : vector<1x128xi1> to vector<8x128xi1>
    %23 = arith.select %22, %19, %20 : vector<8x128xi1>, vector<8x128xf32>
    %24 = arith.mulf %10, %18 : vector<8x128xf32>
    %25 = arith.mulf %11, %23 : vector<8x128xf32>
    %26 = arith.addf %24, %25 : vector<8x128xf32>
    %c0_6 = arith.constant 0 : index
    %c0_7 = arith.constant 0 : index
    %c0_8 = arith.constant 0 : index
    %27 = vector.load %arg5[%c0_6, %c0_7, %c0_8] : memref<1x8x128xf32, #tpu.memory_space<vmem>>, vector<1x8x128xf32>
    %28 = vector.shape_cast %27 : vector<1x8x128xf32> to vector<8x128xf32>
    %29 = vector.shape_cast %26 : vector<8x128xf32> to vector<1x8x128xf32>
    tpu.vector_store %arg5[%c0_6, %c0_7, %c0_8], %29 {strides = array<i32>} : memref<1x8x128xf32, #tpu.memory_space<vmem>>, vector<1x8x128xf32>,
    return
  }
  func.func @transform_0(%arg0: i32, %arg1: i32, %arg2: memref<1xi32, #tpu.memory_space<smem>>) -> (i32, i32) {
    %c0_i32 = arith.constant 0 : i32
    %c0_i32_0 = arith.constant 0 : i32
    %c0_i32_1 = arith.constant 0 : i32
    return %c0_i32, %c0_i32_0 : i32, i32
  }
  func.func @transform_1(%arg0: i32, %arg1: i32, %arg2: memref<1xi32, #tpu.memory_space<smem>>) -> (i32, i32, i32) {
    %c0_i32 = arith.constant 0 : i32
    %c0_i32_0 = arith.constant 0 : i32
    return %arg0, %arg1, %c0_i32 : i32, i32, i32
  }
  func.func @transform_2(%arg0: i32, %arg1: i32, %arg2: memref<1xi32, #tpu.memory_space<smem>>) -> (i32, i32, i32) {
    %c0_i32 = arith.constant 0 : i32
    %c0_i32_0 = arith.constant 0 : i32
    return %arg0, %arg1, %c0_i32 : i32, i32, i32
  }
}

</mosaic_0001>

<bundles_post_ra>
// kernel: rope_pallas.1
= control target key start
LH: loop header
LB: loop body
LE: loop exit
PB: predicated region body
PF: predicated region fallthrough
CT: control target
= control target key end

     0   :  { %s598_s14 = smov 0   ;;  %s600_s15 = smov 0   ;;  %s669_s0 = inlined_call_operand.<no memory space> [shape: s32[1], index: 0, kind: input, shape index: {}]   ;;  %s670_s1 = inlined_call_operand.vmem [shape: f32[1,128], index: 1, kind: input, shape index: {}]   ;;  %s671_s2 = inlined_call_operand.vmem [shape: f32[2,8,128], index: 2, kind: input, shape index: {}]   ;;  %s672_s3 = inlined_call_operand.vmem [shape: f32[2,8,128], index: 3, kind: output, shape index: {}]  }
   0x1   :  { %8 = sst [smem:[#allocation3]] %s669_s0  ;;  %s602_s16 = smov 0  }
   0x2 LB: > { %s26_s0 = sadd.s32 1, %s561_s15  ;;  %p489_p0 = scmp.ge.s32.totalorder %s565_s16, 1  ;;  %s565_s16 = sphi %s602_s16, %s14_s16   ;;  %s561_s15 = sphi %s600_s15, %s674_s15   ;;  %s557_s14 = sphi %s598_s14, %s673_s14  }
   0x3   : > { %p28_p1 = scmp.ge.s32.totalorder %s26_s0, 2  ;;  %p132_p2 = scmp.lt.s32.totalorder %s565_s16, 3 }
   0x5   : > { %s676_s0 = smov (%p28_p1, %s26_s0), 0  ;;  %p133_p3 = pnand %p489_p0, %p132_p2 }
   0x6   : > { %p158_p4 = scmp.lt.s32.totalorder (!%p133_p3), %s557_s14, 1  ;;  %s172_s17 = sld [smem:[#allocation3]] (!%p133_p3)  ;;  %v175_v0 = vlaneseq (!%p133_p3)  ;;  %v492_v5 = vld [vmem:[%s670_s1] ss:$0 sm:$0xff] (!%p133_p3)  ;;  %v569_v19 = vmov (!%p133_p3), 683565275  }
   0x7   : > { %136 = sbr.rel (%p133_p3) target bundleno = 143 (0x8f), region = 28  ;;  %s567_s22 = smov (!%p133_p3), 127   ;;  %v570_v21 = vmov (!%p133_p3), 2475754826   ;;  %v571_v23 = vmov (!%p133_p3), 2131351028  }
   0x8   : > { %v176_v1 = vshrl.u32 (!%p133_p3), %v175_v0, 7  ;;  %s568_s25 = smov (!%p133_p3), 1   ;;  %v572_v25 = vmov (!%p133_p3), 2102212464   ;;  %v573_v27 = vmov (!%p133_p3), 920167782  }
   0x9   : > { %v574_v34 = vmov (!%p133_p3), 1326507024  }
   0xc   : > { %v177_v2 = vstv (!%p133_p3), %s172_s17 }
   0xd   : > { %v178_v4 = vadd.s32 (!%p133_p3), %v177_v2, %v176_v1 }
   0xe   : > { %s678_s14 = smov (!%p158_p4, %s557_s14), 1 }
   0xf   : > { %s490_s18 = sshll.u32 %s678_s14, 3  ;;  %v179_v6 = vcvt.s32.f32 %v178_v4 }
  0x10   : > { %s164_s21 = scalar_lea.vmem %s671_s2, %s490_s18  ;;  %s171_s28 = scalar_lea.vmem %s672_s3, %s490_s18 }
  0x11   : > { %v625_v3 = vld [vmem:[%s164_s21] sm:$0xff]  ;;  %v631_v7 = vmul.f32 %v492_v5, %v179_v6 }
  0x12   : > { %400 = vrot.lane.b32.xlu0 %v625_v3, %s567_s22 }
  0x13   : > { %v191_v8 = vand.u32 2139095040, %v631_v7  ;;  %v188_v10 = vand.u32 2147483647, %v631_v7  ;;  %vm190_vm7 = vcmp.lt.s32.totalorder %v631_v7, 0  ;;  %vm280_vm15 = vweird.f32 %v631_v7 }
  0x15   : > { %v192_v9 = vshrl.u32 %v191_v8, 23  ;;  %v195_v13 = vand.u32 8388607, %v188_v10  ;;  %vm189_vm8 = vcmp.le.f32.partialorder %v188_v10, 0.7853982  ;;  %v396_v10 = vand.u32 127, %v175_v0 }
  0x16   : > { %402 = vrot.lane.b32.xlu0 %v625_v3, %s568_s25 }
  0x17   : > { %v493_v11 = vadd.s32 4294967169, %v192_v9  ;;  %v196_v16 = vor.u32 8388608, %v195_v13 }
  0x19   : > { %v198_v12 = vadd.s32 1, %v493_v11  ;;  %v236_v36 = vshll.u32 %v196_v16, 8 }
  0x1b   : > { %vm199_vm0 = vcmp.gt.s32.totalorder %v198_v12, 0 }
  0x1c   : > { %v200_v14 = vsel %vm199_vm0, %v198_v12, 0 }
  0x1d   : > { %v202_v15 = vand.u32 31, %v200_v14  ;;  %v201_v17 = vshrl.u32 %v200_v14, 5 }
  0x1f   : > { %v203_v18 = vsub.s32 32, %v202_v15  ;;  %v205_v20 = vshll.u32 %v569_v19, %v202_v15  ;;  %v208_v22 = vshll.u32 %v570_v21, %v202_v15  ;;  %v211_v24 = vshll.u32 %v571_v23, %v202_v15 }
  0x20   : > { %v214_v26 = vshll.u32 %v572_v25, %v202_v15  ;;  %v217_v28 = vshll.u32 %v573_v27, %v202_v15  ;;  %vm220_vm1 = vcmp.lt.s32.totalorder %v201_v17, 1  ;;  %vm223_vm2 = vcmp.lt.s32.totalorder %v201_v17, 4 }
  0x21   : > { %v204_v29 = vshrl.u32 %v569_v19, %v203_v18  ;;  %v206_v30 = vshrl.u32 %v570_v21, %v203_v18  ;;  %v209_v31 = vshrl.u32 %v571_v23, %v203_v18  ;;  %v212_v32 = vshrl.u32 %v572_v25, %v203_v18 }
  0x22   : > { %v215_v33 = vshrl.u32 %v573_v27, %v203_v18  ;;  %v218_v35 = vshrl.u32 %v574_v34, %v203_v18  ;;  %vm221_vm3 = vcmp.lt.s32.totalorder %v201_v17, 2  ;;  %vm222_vm4 = vcmp.lt.s32.totalorder %v201_v17, 3 }
  0x23   : > { %v207_v37 = vor.u32 %v206_v30, %v205_v20  ;;  %v210_v38 = vor.u32 %v209_v31, %v208_v22  ;;  %v213_v39 = vor.u32 %v212_v32, %v211_v24 }
  0x24   : > { %v216_v40 = vor.u32 %v215_v33, %v214_v26  ;;  %v219_v41 = vor.u32 %v218_v35, %v217_v28 }
  0x25   : > { %v224_v42 = vsel %vm220_vm1, %v204_v29, %v207_v37  ;;  %v225_v43 = vsel %vm223_vm2, %v213_v39, 2102212464  ;;  %v228_v44 = vsel %vm220_vm1, %v207_v37, %v210_v38  ;;  %v232_v45 = vsel %vm220_vm1, %v210_v38, %v213_v39 }
  0x26   : > { %v226_v46 = vsel %vm222_vm4, %v210_v38, %v225_v43  ;;  %v229_v47 = vsel %vm223_vm2, %v216_v40, 920167782  ;;  %v233_v48 = vsel %vm223_vm2, %v219_v41, 1326507024  ;;  %v397_v41 = vand.u32 1, %v396_v10 }
  0x27   : > { %v230_v49 = vsel %vm222_vm4, %v213_v39, %v229_v47  ;;  %v234_v50 = vsel %vm222_vm4, %v216_v40, %v233_v48  ;;  %v227_v51 = vsel %vm221_vm3, %v224_v42, %v226_v46 }
  0x28   : > { %v231_v52 = vsel %vm221_vm3, %v228_v44, %v230_v49  ;;  %v235_v53 = vsel %vm221_vm3, %v232_v45, %v234_v50  ;;  %v243_v58 = vmul.u32 %v236_v36, %v227_v51  ;;  %vm398_vm0 = vcmp.eq.s32.totalorder %v397_v41, 0 }
  0x29   : > { %v638_v54 = vmul.u32.u64.low %v236_v36, %v235_v53  ;;  %v639_v55 = vmul.u32.u64.high %v236_v36, %v235_v53, %v638_v54  ;;  %v641_v56 = vmul.u32.u64.low %v236_v36, %v231_v52  ;;  %v642_v57 = vmul.u32.u64.high %v236_v36, %v231_v52, %v641_v56 }
  0x2b   : > { %vm245_vm5 = vc.u32 %v639_v55, %v641_v56  ;;  %v246_v59 = vadd.s32 1, %v642_v57  ;;  %v244_v12 = vadd.s32 %v641_v56, %v639_v55 }
  0x2d   : > { %v247_v60 = vsel %vm245_vm5, %v246_v59, %v642_v57 }
  0x2e   : > { %v248_v61 = vadd.s32 %v247_v60, %v243_v58 }
  0x30   : > { %v249_v62 = vadd.s32 536870912, %v248_v61 }
  0x32   : > { %v250_v63 = vshrl.u32 %v249_v62, 30 }
  0x34   : > { %v251_v1 = vshll.u32 %v250_v63, 30  ;;  %v274_v26 = vsub.s32 4, %v250_v63 }
  0x36   : > { %v252_v2 = vsub.s32 %v248_v61, %v251_v1  ;;  %v275_v27 = vsel %vm190_vm7, %v274_v26, %v250_v63 }
  0x37   : > { %v277_v28 = vsel %vm189_vm8, 0, %v275_v27 }
  0x38   : > { %v254_v4 = vsub.s32 0, %v252_v2  ;;  %v384_v29 = vadd.s32 3, %v277_v28  ;;  %v281_v32 = vand.u32 3, %v277_v28 }
  0x3a   : > { %v494_v5 = vmin.u32 %v254_v4, %v252_v2  ;;  %v385_v33 = vand.u32 3, %v384_v29  ;;  %vm283_vm9 = vcmp.eq.s32.totalorder %v281_v32, 0  ;;  %vm286_vm10 = vcmp.eq.s32.totalorder %v281_v32, 2 }
  0x3b   : > { %vm282_vm13 = vcmp.lt.s32.totalorder %v281_v32, 2 }
  0x3c   : > { %v256_v6 = vclz %v494_v5  ;;  %vm387_vm11 = vcmp.eq.s32.totalorder %v385_v33, 0  ;;  %vm390_vm12 = vcmp.eq.s32.totalorder %v385_v33, 2  ;;  %vm386_vm14 = vcmp.lt.s32.totalorder %v385_v33, 2 }
  0x3e   : > { %v495_v8 = vadd.s32 4294967294, %v256_v6 }
  0x40   : > { %vm496_vm6 = vcmp.lt.s32.totalorder %v495_v8, 0 }
  0x41   : > { %v259_v9 = vsel %vm496_vm6, 0, %v495_v8 }
  0x42   : > { %v264_v11 = vsub.s32 4294967266, %v259_v9  ;;  %v260_v13 = vsub.s32 32, %v259_v9  ;;  %v261_v15 = vshll.u32 %v252_v2, %v259_v9 }
  0x44   : > { %v265_v14 = vadd.s32 127, %v264_v11  ;;  %v262_v16 = vshrl.u32 %v244_v12, %v260_v13 }
  0x46   : > { %v266_v17 = vshll.u32 %v265_v14, 23  ;;  %v263_v18 = vor.u32 %v262_v16, %v261_v15 }
  0x48   : > { %v267_v19 = vor.u32 4788187, %v266_v17  ;;  %v270_v21 = vcvt.s32.f32 %v263_v18 }
  0x4a   : > { %v268_v20 = vand.u32 2147483647, %v267_v19 }
  0x4c   : > { %v271_v22 = vmul.f32 %v270_v21, %v268_v20 }
  0x4e   : > { %v272_v23 = vxor.u32 2147483648, %v271_v22 }
  0x50   : > { %v273_v24 = vsel %vm190_vm7, %v272_v23, %v271_v22 }
  0x51   : > { %v276_v25 = vsel %vm189_vm8, %v631_v7, %v273_v24 }
  0x52   : > { %539 = vcosq.f32 %v276_v25 }
  0x53   : > { %541 = vsinq.f32 %v276_v25 }
  0x5c   : > { %v540_v30 = vpop.eup %539 }
  0x5d   : > { %v542_v31 = vpop.eup %541  ;;  %v287_v35 = vxor.u32 2147483648, %v540_v30 }
  0x5e   : > { %v284_v34 = vxor.u32 2147483648, %v542_v31 }
  0x5f   : > { %v288_v37 = vsel %vm286_vm10, %v287_v35, %v542_v31  ;;  %v392_v39 = vsel %vm390_vm12, %v287_v35, %v542_v31 }
  0x60   : > { %v285_v36 = vsel %vm283_vm9, %v540_v30, %v284_v34  ;;  %v389_v38 = vsel %vm387_vm11, %v540_v30, %v284_v34 }
  0x61   : > { %v289_v40 = vsel %vm282_vm13, %v285_v36, %v288_v37  ;;  %v393_v43 = vsel %vm386_vm14, %v389_v38, %v392_v39 }
  0x62   : > { %v290_v44 = vsel %vm280_vm15, nan, %v289_v40  ;;  %v394_v45 = vsel %vm280_vm15, nan, %v393_v43 }
  0x63   : > { %v407_v46 = vmul.f32 %v625_v3, %v290_v44 }
  0x84   : > { %v401_v42 = vpop.permute.xlu0 %400 }
  0x88   : > { %v403_v47 = vpop.permute.xlu0 %402 }
  0x89   : > { %v406_v0 = vsel %vm398_vm0, %v401_v42, %v403_v47 }
  0x8a   : > { %v408_v48 = vmul.f32 %v406_v0, %v394_v45 }
  0x8c   : > { %v409_v49 = vadd.f32 %v408_v48, %v407_v46 }
  0x8e   : > { %410 = vst [vmem:[%s171_s28] sm:$0xff] %v409_v49 }
  0x8f PF: > { %s14_s16 = sadd.s32 1, %s565_s16   ;;  %s673_s14 = smov %s561_s15 }
  0x90   : > { %p11_p5 = scmp.ge.s32.totalorder %s14_s16, 4   ;;  %s674_s15 = smov %s676_s0 }
  0x92   :  { %13 = sbr.rel (!%p11_p5) target bundleno = 2 (0x2), region = 58 }

</bundles_post_ra>
